<compile_context>
chip_gen: v7x
topology: tpu7x:2x2x1
jax: 0.10.0
libtpu: 0.0.40
codegen_flags: <defaults>
</compile_context>

<pallas_src>
import math

import jax
import jax.numpy as jnp
from jax import lax
from jax.experimental import pallas as pl
from jax.experimental.pallas import tpu as pltpu

LANE = 128            # vreg lane width
SUB = 8               # vreg sublane count (f32)
SMOOTH = 1.0
_PAD_LOGIT = -3.0e4   # sigmoid==0, softplus==0 -> padded elements contribute exactly 0
_SUBCHUNK = 512       # rows per in-kernel fori_loop sub-chunk (bounds VMEM temporaries)


def _round_up(x, m):
    return -(-x // m) * m


def _vmem_capacity_bytes():
    """Best-effort VMEM capacity query; conservative fallback if unavailable."""
    try:
        info = pltpu.get_tpu_info()
        cap = getattr(info, "vmem_capacity_bytes", None)
        if cap:
            return int(cap)
    except Exception:
        pass
    return 64 * 1024 * 1024   # conservative (v7x-sized) fallback


def _num_tensorcores():
    """Best-effort TensorCores-per-device probe; falls back to 1 (never wastes work)."""
    try:
        dev = jax.local_devices()[0]
        for name in ("num_cores", "core_count", "num_tensorcores"):
            v = getattr(dev, name, None)
            if isinstance(v, int) and v > 0:
                return v
    except Exception:
        pass
    try:
        info = pltpu.get_tpu_info()
        for name in ("num_cores", "tensorcore_count", "num_tensorcores"):
            v = getattr(info, name, None)
            if isinstance(v, int) and v > 0:
                return v
    except Exception:
        pass
    return 1


def _pick_tiles(M, tr_cap):
    """Return (m_view, R, TR, SC): flat view length, row count, tile rows, sub-chunk rows."""
    if M % LANE != 0 or M < SUB * LANE:
        # Unavoidable: the (R,128) view needs 128-aligned rows; tiny inputs get one (8,128) tile.
        m_view = max(_round_up(M, LANE), SUB * LANE)
    else:
        m_view = M                      # zero-copy: reshape only, no HBM rewrite
    R = m_view // LANE
    if R >= _SUBCHUNK:
        TR = _SUBCHUNK * min(tr_cap // _SUBCHUNK, R // _SUBCHUNK)
        SC = _SUBCHUNK
    else:
        TR = (R // SUB) * SUB           # largest multiple of 8 that is <= R (R >= 8 here)
        SC = TR
    return m_view, R, TR, SC


def dismap_combo_loss(output, target, distance_map, alpha=0.5):
    """JAX/Pallas equivalent of DismapComboLoss.forward(output, target, distance_map)."""
    N = output.shape[0]
    M = math.prod(output.shape[1:])
    assert target.shape[0] == N and distance_map.shape[0] == N
    assert math.prod(target.shape[1:]) == M and math.prod(distance_map.shape[1:]) == M

    # ---- generation-aware tiling / VMEM budget ----
    vmem_cap = _vmem_capacity_bytes()
    tr_cap = 4096 if vmem_cap >= 100 * 1024 * 1024 else 2048
    vmem_limit = int(min(64 * 1024 * 1024, vmem_cap // 2))

    m_view, R, TR, SC = _pick_tiles(M, tr_cap)
    tiles_total = -(-R // TR)                     # number of TR-row tiles (last may be partial)

    # Chunk split so multi-TensorCore chips stay busy at small batch.  An even split is free on
    # 1-TC chips too; an uneven split (one fully-masked duplicate tile) only when >=2 cores.
    cores = _num_tensorcores()
    K = 1
    if N < 4 and tiles_total >= 2 and (tiles_total % 2 == 0 or cores >= 2):
        K = 2
    T = -(-tiles_total // K)                      # tiles per chunk

    may_need_mask = (R % TR != 0) or (K * T != tiles_total)
    n_sub = TR // SC
    unroll = 2 if (n_sub >= 2 and n_sub % 2 == 0) else 1

    def to_view(x, pad_value):
        xf = x.reshape(N, M)                      # collapse of contiguous dims: free
        if m_view != M:
            # Only when M is not 128-aligned (or tiny): pad the lane tail with values that
            # contribute exactly 0 to every partial sum.
            xf = jnp.pad(xf, ((0, 0), (0, m_view - M)), constant_values=pad_value)
        return xf.reshape(N, m_view // LANE, LANE)

    o3 = to_view(output, _PAD_LOGIT)
    t3 = to_view(target, 0)
    d3 = to_view(distance_map, 0)

    def kernel(o_ref, t_ref, d_ref, out_ref, acc_ref):
        """acc_ref: VMEM (3,8,128) f32 lane-wise running sums for the current (batch, chunk):
           [0] sum(sig*t)   [1] sum((d+1)*(sig+t) - d*sig*t)   [2] sum((t*x - softplus(x))*(d+1))
        """
        k = pl.program_id(1)
        jt = pl.program_id(2)
        n_t = pl.num_programs(2)

        @pl.when(jt == 0)
        def _():
            acc_ref[...] = jnp.zeros_like(acc_ref)

        # Global (unclamped) first row of this tile; used both for the validity mask and to
        # detect the fully-masked duplicate tile produced by an uneven chunk split.
        row0 = (k * n_t + jt) * TR

        def accumulate(masked):
            row_iota = lax.broadcasted_iota(jnp.int32, (SC, LANE), 0) if masked else None

            def body(c, carry):
                a0, a1, a2 = carry
                start = pl.multiple_of(c * SC, SC)
                x = o_ref[pl.ds(start, SC), :].astype(jnp.float32)   # logits
                t = t_ref[pl.ds(start, SC), :].astype(jnp.float32)   # target {0,1}
                d = d_ref[pl.ds(start, SC), :].astype(jnp.float32)   # distance map
                if masked:
                    valid = (row0 + start + row_iota) < R
                    x = jnp.where(valid, x, _PAD_LOGIT)              # -> sig=0, softplus=0
                    t = jnp.where(valid, t, 0.0)
                    d = jnp.where(valid, d, 0.0)

                # Stable sigmoid / softplus sharing one exp:
                #   e = exp(-|x|); sigmoid = (x>=0 ? 1 : e)/(1+e); softplus = max(x,0)+log1p(e)
                # BCE in logits form: t*log(sig) + (1-t)*log(1-sig) == t*x - softplus(x)
                e = jnp.exp(-jnp.abs(x))
                inv = pl.reciprocal(1.0 + e, approx=True)            # EUP, off the VPU
                sig = jnp.where(x >= 0.0, inv, e * inv)
                softplus = jnp.maximum(x, 0.0) + jnp.log1p(e)

                d1 = d + 1.0
                inter = sig * t
                denom = d1 * (sig + t) - d * inter
                ce = (t * x - softplus) * d1

                # Fold (SC,128) -> (8,128) with VPU adds; cross-lane reduction is wrapper glue.
                fold = lambda v: jnp.sum(v.reshape(SC // SUB, SUB, LANE), axis=0)
                return (a0 + fold(inter), a1 + fold(denom), a2 + fold(ce))

            zero = jnp.zeros((SUB, LANE), jnp.float32)
            a0, a1, a2 = lax.fori_loop(0, n_sub, body, (zero, zero, zero), unroll=unroll)
            acc_ref[0] += a0
            acc_ref[1] += a1
            acc_ref[2] += a2

        if may_need_mask:
            needs_mask = row0 + TR > R

            @pl.when(needs_mask)
            def _():
                accumulate(True)

            @pl.when(jnp.logical_not(needs_mask))
            def _():
                accumulate(False)
        else:
            accumulate(False)

        @pl.when(jt == n_t - 1)
        def _():
            out_ref[...] = acc_ref[...]

    # Clamp the tile index so an uneven chunk split never issues an out-of-bounds DMA; the
    # duplicated tile is fully masked in-kernel (contributes exactly 0).
    in_map = lambda i, k, jt: (i, jnp.minimum(k * T + jt, tiles_total - 1), 0)

    parts = pl.pallas_call(
        kernel,
        out_shape=jax.ShapeDtypeStruct((N, K, 3, SUB, LANE), jnp.float32),
        grid_spec=pltpu.PrefetchScalarGridSpec(
            num_scalar_prefetch=0,
            grid=(N, K, T),
            in_specs=[
                pl.BlockSpec((None, TR, LANE), in_map),
                pl.BlockSpec((None, TR, LANE), in_map),
                pl.BlockSpec((None, TR, LANE), in_map),
            ],
            out_specs=pl.BlockSpec((None, None, 3, SUB, LANE),
                                   lambda i, k, jt: (i, k, 0, 0, 0)),
            scratch_shapes=[pltpu.VMEM((3, SUB, LANE), jnp.float32)],
        ),
        compiler_params=pltpu.CompilerParams(
            dimension_semantics=("parallel", "parallel", "arbitrary"),
            vmem_limit_bytes=vmem_limit,
        ),
    )(o3, t3, d3)

    # Tiny epilogue in plain JAX: combine partial sums, then dice / CE / combo / batch mean.
    sums = parts.sum(axis=(1, 3, 4))              # (N, 3)
    s_inter, s_denom, s_ce = sums[:, 0], sums[:, 1], sums[:, 2]
    dice = 2.0 * (s_inter + SMOOTH) / s_denom
    ce = s_ce / M                                 # divide by the *unpadded* element count
    combo = -alpha * ce - (1.0 - alpha) * dice
    return combo.sum() / N


def _reference_loss(output, target, distance_map, alpha=0.5):
    """Pure-JAX reference mirroring the PyTorch forward exactly (sigmoid path)."""
    N = output.shape[0]
    o = jax.nn.sigmoid(output.astype(jnp.float32)).reshape(N, -1)
    t = target.astype(jnp.float32).reshape(N, -1)
    d = distance_map.astype(jnp.float32).reshape(N, -1)
    inter = o * t
    union = o + t
    dice = 2.0 * (inter.sum(1) + SMOOTH) / (((d + 1.0) * union).sum(1) - (d * inter).sum(1))
    fn = t * jnp.log(o)
    fp = (1.0 - t) * jnp.log(1.0 - o)
    ce = ((fn + fp) * (d + 1.0)).sum(1) / o.shape[1]
    combo = -alpha * ce - (1.0 - alpha) * dice
    return combo.sum() / N


if __name__ == "__main__":
    key = jax.random.PRNGKey(0)

    def make_case(k, shape):
        k1, k2, k3 = jax.random.split(k, 3)
        logits = jax.random.normal(k1, shape, dtype=jnp.float32)
        # target / distance_map in bf16: exact for {0,1} targets, halves HBM traffic.
        tgt = (jax.random.uniform(k2, shape) > 0.5).astype(jnp.bfloat16)
        dmap = (jax.random.uniform(k3, shape) * 3.0).astype(jnp.bfloat16)
        return logits, tgt, dmap

    k_a, k_b, k_c = jax.random.split(key, 3)

    # Case A: M = 4*16*16 = 1024 (1024-aligned) -> zero-copy, single full tile, no masking.
    la, ta, da = make_case(k_a, (2, 4, 16, 16))
    loss_a = jax.block_until_ready(dismap_combo_loss(la, ta, da, alpha=0.5))
    ref_a = _reference_loss(la, ta, da, alpha=0.5)
    assert jnp.allclose(loss_a, ref_a, rtol=1e-3, atol=1e-3), (loss_a, ref_a)

    # Case B: M = 3*16*48 = 2304 = 18*128 (128-aligned, not 1024-aligned) -> zero-copy path
    # exercising the in-kernel partial-tile mask and the 2-chunk parallel split.
    lb, tb, db = make_case(k_b, (2, 3, 16, 48))
    loss_b = jax.block_until_ready(dismap_combo_loss(lb, tb, db, alpha=0.5))
    ref_b = _reference_loss(lb, tb, db, alpha=0.5)
    assert jnp.allclose(loss_b, ref_b, rtol=1e-3, atol=1e-3), (loss_b, ref_b)

    # Case C: M = 3*10*10 = 300 (not 128-aligned) -> small lane-tail pad with contribute-zero values.
    lc, tc, dc = make_case(k_c, (1, 3, 10, 10))
    loss_c = jax.block_until_ready(dismap_combo_loss(lc, tc, dc, alpha=0.5))
    ref_c = _reference_loss(lc, tc, dc, alpha=0.5)
    assert jnp.allclose(loss_c, ref_c, rtol=1e-3, atol=1e-3), (loss_c, ref_c)

    print("KERNEL_OK")
</pallas_src>

<mosaic_0001>
module attributes {stable_mosaic.version = 11 : i64} {
  func.func @kernel(%arg0: i32, %arg1: i32, %arg2: i32, %arg3: memref<1x8x128xf32, #tpu.memory_space<vmem>>, %arg4: memref<1x8x128xbf16, #tpu.memory_space<vmem>>, %arg5: memref<1x8x128xbf16, #tpu.memory_space<vmem>>, %arg6: memref<1x1x3x8x128xf32, #tpu.memory_space<vmem>>, %arg7: memref<3x8x128xf32, #tpu.memory_space<vmem>>) attributes {dimension_semantics = [#tpu.dimension_semantics<parallel>, #tpu.dimension_semantics<parallel>, #tpu.dimension_semantics<arbitrary>], iteration_bounds = array<i64: 2, 1, 1>, scalar_prefetch = 0 : i64, scratch_operands = 1 : i64, tpu.core_type = #tpu.core_type<tc>, window_params = [{transform_indices = @transform_0, window_bounds = array<i64: 1, 8, 128>}, {transform_indices = @transform_1, window_bounds = array<i64: 1, 8, 128>}, {transform_indices = @transform_2, window_bounds = array<i64: 1, 8, 128>}, {transform_indices = @transform_3, window_bounds = array<i64: 1, 1, 3, 8, 128>}]} {
    %c0_i32 = arith.constant 0 : i32
    %0 = arith.cmpi eq, %arg2, %c0_i32 : i32
    %1 = arith.extui %0 : i1 to i32
    %c0_i32_0 = arith.constant 0 : i32
    %2 = arith.cmpi ne, %1, %c0_i32_0 : i32
    scf.if %2 {
      %cst_33 = arith.constant 0.000000e+00 : f32
      %72 = vector.broadcast %cst_33 : f32 to vector<3x8x128xf32>
      %c0_34 = arith.constant 0 : index
      %c0_35 = arith.constant 0 : index
      %c0_36 = arith.constant 0 : index
      %73 = vector.load %arg7[%c0_34, %c0_35, %c0_36] : memref<3x8x128xf32, #tpu.memory_space<vmem>>, vector<3x8x128xf32>
      tpu.vector_store %arg7[%c0_34, %c0_35, %c0_36], %72 {strides = array<i32>} : memref<3x8x128xf32, #tpu.memory_space<vmem>>, vector<3x8x128xf32>,
    } else {
    }
    %cst = arith.constant 0.000000e+00 : f32
    %3 = vector.broadcast %cst : f32 to vector<8x128xf32>
    %c0_i32_1 = arith.constant 0 : i32
    %c8_i32 = arith.constant 8 : i32
    %4 = arith.muli %c0_i32_1, %c8_i32 : i32
    %5 = tpu.assume_multiple %4, 8 : i32
    %c0 = arith.constant 0 : index
    %6 = arith.index_cast %5 : i32 to index
    %c0_2 = arith.constant 0 : index
    %7 = vector.load %arg3[%c0, %6, %c0_2] : memref<1x8x128xf32, #tpu.memory_space<vmem>>, vector<1x8x128xf32>
    %8 = vector.shape_cast %7 : vector<1x8x128xf32> to vector<8x128xf32>
    %c0_3 = arith.constant 0 : index
    %9 = arith.index_cast %5 : i32 to index
    %c0_4 = arith.constant 0 : index
    %10 = vector.load %arg4[%c0_3, %9, %c0_4] : memref<1x8x128xbf16, #tpu.memory_space<vmem>>, vector<1x8x128xbf16>
    %11 = vector.shape_cast %10 : vector<1x8x128xbf16> to vector<8x128xbf16>
    %12 = arith.extf %11 : vector<8x128xbf16> to vector<8x128xf32>
    %c0_5 = arith.constant 0 : index
    %13 = arith.index_cast %5 : i32 to index
    %c0_6 = arith.constant 0 : index
    %14 = vector.load %arg5[%c0_5, %13, %c0_6] : memref<1x8x128xbf16, #tpu.memory_space<vmem>>, vector<1x8x128xbf16>
    %15 = vector.shape_cast %14 : vector<1x8x128xbf16> to vector<8x128xbf16>
    %16 = arith.extf %15 : vector<8x128xbf16> to vector<8x128xf32>
    %17 = math.absf %8 : vector<8x128xf32>
    %cst_7 = arith.constant 0.000000e+00 : f32
    %18 = vector.broadcast %cst_7 : f32 to vector<8x128xf32>
    %19 = arith.subf %18, %17 : vector<8x128xf32>
    %20 = math.exp %19 : vector<8x128xf32>
    %cst_8 = arith.constant 1.000000e+00 : f32
    %21 = vector.broadcast %cst_8 : f32 to vector<8x128xf32>
    %22 = arith.addf %21, %20 : vector<8x128xf32>
    %23 = tpu.reciprocal %22 {approx = true} : vector<8x128xf32> -> vector<8x128xf32>
    %cst_9 = arith.constant 0.000000e+00 : f32
    %24 = vector.broadcast %cst_9 : f32 to vector<8x128xf32>
    %25 = arith.cmpf oge, %8, %24 : vector<8x128xf32>
    %26 = arith.mulf %20, %23 : vector<8x128xf32>
    %27 = arith.select %25, %23, %26 : vector<8x128xi1>, vector<8x128xf32>
    %cst_10 = arith.constant 0.000000e+00 : f32
    %28 = vector.broadcast %cst_10 : f32 to vector<8x128xf32>
    %29 = arith.maximumf %8, %28 : vector<8x128xf32>
    %30 = math.log1p %20 : vector<8x128xf32>
    %31 = arith.addf %29, %30 : vector<8x128xf32>
    %cst_11 = arith.constant 1.000000e+00 : f32
    %32 = vector.broadcast %cst_11 : f32 to vector<8x128xf32>
    %33 = arith.addf %16, %32 : vector<8x128xf32>
    %34 = arith.mulf %27, %12 : vector<8x128xf32>
    %35 = arith.addf %27, %12 : vector<8x128xf32>
    %36 = arith.mulf %33, %35 : vector<8x128xf32>
    %37 = arith.mulf %16, %34 : vector<8x128xf32>
    %38 = arith.subf %36, %37 : vector<8x128xf32>
    %39 = arith.mulf %12, %8 : vector<8x128xf32>
    %40 = arith.subf %39, %31 : vector<8x128xf32>
    %41 = arith.mulf %40, %33 : vector<8x128xf32>
    %42 = vector.shape_cast %34 : vector<8x128xf32> to vector<1x8x128xf32>
    %cst_12 = arith.constant dense<0.000000e+00> : vector<8x128xf32>
    %43 = vector.multi_reduction <add>, %42, %cst_12 [0] : vector<1x8x128xf32> to vector<8x128xf32>
    %44 = arith.addf %3, %43 : vector<8x128xf32>
    %45 = vector.shape_cast %38 : vector<8x128xf32> to vector<1x8x128xf32>
    %cst_13 = arith.constant dense<0.000000e+00> : vector<8x128xf32>
    %46 = vector.multi_reduction <add>, %45, %cst_13 [0] : vector<1x8x128xf32> to vector<8x128xf32>
    %47 = arith.addf %3, %46 : vector<8x128xf32>
    %48 = vector.shape_cast %41 : vector<8x128xf32> to vector<1x8x128xf32>
    %cst_14 = arith.constant dense<0.000000e+00> : vector<8x128xf32>
    %49 = vector.multi_reduction <add>, %48, %cst_14 [0] : vector<1x8x128xf32> to vector<8x128xf32>
    %50 = arith.addf %3, %49 : vector<8x128xf32>
    %c1_i32 = arith.constant 1 : i32
    %c0_15 = arith.constant 0 : index
    %c0_16 = arith.constant 0 : index
    %c0_17 = arith.constant 0 : index
    %51 = vector.load %arg7[%c0_15, %c0_16, %c0_17] : memref<3x8x128xf32, #tpu.memory_space<vmem>>, vector<1x8x128xf32>
    %52 = vector.shape_cast %51 : vector<1x8x128xf32> to vector<8x128xf32>
    %53 = arith.addf %52, %44 : vector<8x128xf32>
    %c0_18 = arith.constant 0 : index
    %c0_19 = arith.constant 0 : index
    %c0_20 = arith.constant 0 : index
    %54 = vector.load %arg7[%c0_18, %c0_19, %c0_20] : memref<3x8x128xf32, #tpu.memory_space<vmem>>, vector<1x8x128xf32>
    %55 = vector.shape_cast %54 : vector<1x8x128xf32> to vector<8x128xf32>
    %56 = vector.shape_cast %53 : vector<8x128xf32> to vector<1x8x128xf32>
    tpu.vector_store %arg7[%c0_18, %c0_19, %c0_20], %56 {strides = array<i32>} : memref<3x8x128xf32, #tpu.memory_space<vmem>>, vector<1x8x128xf32>,
    %c1 = arith.constant 1 : index
    %c0_21 = arith.constant 0 : index
    %c0_22 = arith.constant 0 : index
    %57 = vector.load %arg7[%c1, %c0_21, %c0_22] : memref<3x8x128xf32, #tpu.memory_space<vmem>>, vector<1x8x128xf32>
    %58 = vector.shape_cast %57 : vector<1x8x128xf32> to vector<8x128xf32>
    %59 = arith.addf %58, %47 : vector<8x128xf32>
    %c1_23 = arith.constant 1 : index
    %c0_24 = arith.constant 0 : index
    %c0_25 = arith.constant 0 : index
    %60 = vector.load %arg7[%c1_23, %c0_24, %c0_25] : memref<3x8x128xf32, #tpu.memory_space<vmem>>, vector<1x8x128xf32>
    %61 = vector.shape_cast %60 : vector<1x8x128xf32> to vector<8x128xf32>
    %62 = vector.shape_cast %59 : vector<8x128xf32> to vector<1x8x128xf32>
    tpu.vector_store %arg7[%c1_23, %c0_24, %c0_25], %62 {strides = array<i32>} : memref<3x8x128xf32, #tpu.memory_space<vmem>>, vector<1x8x128xf32>,
    %c2 = arith.constant 2 : index
    %c0_26 = arith.constant 0 : index
    %c0_27 = arith.constant 0 : index
    %63 = vector.load %arg7[%c2, %c0_26, %c0_27] : memref<3x8x128xf32, #tpu.memory_space<vmem>>, vector<1x8x128xf32>
    %64 = vector.shape_cast %63 : vector<1x8x128xf32> to vector<8x128xf32>
    %65 = arith.addf %64, %50 : vector<8x128xf32>
    %c2_28 = arith.constant 2 : index
    %c0_29 = arith.constant 0 : index
    %c0_30 = arith.constant 0 : index
    %66 = vector.load %arg7[%c2_28, %c0_29, %c0_30] : memref<3x8x128xf32, #tpu.memory_space<vmem>>, vector<1x8x128xf32>
    %67 = vector.shape_cast %66 : vector<1x8x128xf32> to vector<8x128xf32>
    %68 = vector.shape_cast %65 : vector<8x128xf32> to vector<1x8x128xf32>
    tpu.vector_store %arg7[%c2_28, %c0_29, %c0_30], %68 {strides = array<i32>} : memref<3x8x128xf32, #tpu.memory_space<vmem>>, vector<1x8x128xf32>,
    %c0_i32_31 = arith.constant 0 : i32
    %69 = arith.cmpi eq, %arg2, %c0_i32_31 : i32
    %70 = arith.extui %69 : i1 to i32
    %c0_i32_32 = arith.constant 0 : i32
    %71 = arith.cmpi ne, %70, %c0_i32_32 : i32
    scf.if %71 {
      %c0_33 = arith.constant 0 : index
      %c0_34 = arith.constant 0 : index
      %c0_35 = arith.constant 0 : index
      %72 = vector.load %arg7[%c0_33, %c0_34, %c0_35] : memref<3x8x128xf32, #tpu.memory_space<vmem>>, vector<3x8x128xf32>
      %c0_36 = arith.constant 0 : index
      %c0_37 = arith.constant 0 : index
      %c0_38 = arith.constant 0 : index
      %c0_39 = arith.constant 0 : index
      %c0_40 = arith.constant 0 : index
      %73 = vector.load %arg6[%c0_36, %c0_37, %c0_38, %c0_39, %c0_40] : memref<1x1x3x8x128xf32, #tpu.memory_space<vmem>>, vector<1x1x3x8x128xf32>
      %74 = vector.shape_cast %73 : vector<1x1x3x8x128xf32> to vector<3x8x128xf32>
      %75 = vector.shape_cast %72 : vector<3x8x128xf32> to vector<1x1x3x8x128xf32>
      tpu.vector_store %arg6[%c0_36, %c0_37, %c0_38, %c0_39, %c0_40], %75 {strides = array<i32>} : memref<1x1x3x8x128xf32, #tpu.memory_space<vmem>>, vector<1x1x3x8x128xf32>,
    } else {
    }
    return
  }
  func.func @transform_0(%arg0: i32, %arg1: i32, %arg2: i32) -> (i32, i32, i32) {
    %c1_i32 = arith.constant 1 : i32
    %0 = arith.muli %arg1, %c1_i32 : i32
    %1 = arith.addi %0, %arg2 : i32
    %c0_i32 = arith.constant 0 : i32
    %2 = arith.minsi %1, %c0_i32 : i32
    %c0_i32_0 = arith.constant 0 : i32
    %c0_i32_1 = arith.constant 0 : i32
    return %arg0, %2, %c0_i32_0 : i32, i32, i32
  }
  func.func @transform_1(%arg0: i32, %arg1: i32, %arg2: i32) -> (i32, i32, i32) {
    %c1_i32 = arith.constant 1 : i32
    %0 = arith.muli %arg1, %c1_i32 : i32
    %1 = arith.addi %0, %arg2 : i32
    %c0_i32 = arith.constant 0 : i32
    %2 = arith.minsi %1, %c0_i32 : i32
    %c0_i32_0 = arith.constant 0 : i32
    %c0_i32_1 = arith.constant 0 : i32
    return %arg0, %2, %c0_i32_0 : i32, i32, i32
  }
  func.func @transform_2(%arg0: i32, %arg1: i32, %arg2: i32) -> (i32, i32, i32) {
    %c1_i32 = arith.constant 1 : i32
    %0 = arith.muli %arg1, %c1_i32 : i32
    %1 = arith.addi %0, %arg2 : i32
    %c0_i32 = arith.constant 0 : i32
    %2 = arith.minsi %1, %c0_i32 : i32
    %c0_i32_0 = arith.constant 0 : i32
    %c0_i32_1 = arith.constant 0 : i32
    return %arg0, %2, %c0_i32_0 : i32, i32, i32
  }
  func.func @transform_3(%arg0: i32, %arg1: i32, %arg2: i32) -> (i32, i32, i32, i32, i32) {
    %c0_i32 = arith.constant 0 : i32
    %c0_i32_0 = arith.constant 0 : i32
    %c0_i32_1 = arith.constant 0 : i32
    %c0_i32_2 = arith.constant 0 : i32
    return %arg0, %arg1, %c0_i32, %c0_i32_0, %c0_i32_1 : i32, i32, i32, i32, i32
  }
}

</mosaic_0001>

<bundles_post_ra>
// kernel: tpu_custom_call.1
= control target key start
LH: loop header
LB: loop body
LE: loop exit
PB: predicated region body
PF: predicated region fallthrough
CT: control target
= control target key end

     0   :  { %s1102_s0 = inlined_call_operand.hbm [shape: f32[2,8,128], index: 0, kind: input, shape index: {}]   ;;  %s1103_s1 = inlined_call_operand.hbm [shape: bf16[2,8,128], index: 1, kind: input, shape index: {}]   ;;  %s1104_s2 = inlined_call_operand.hbm [shape: bf16[2,8,128], index: 2, kind: input, shape index: {}]   ;;  %s1105_s3 = inlined_call_operand.hbm [shape: f32[2,1,3,8,128], index: 3, kind: output, shape index: {}]  }
   0x1   :  { %1111 = sst [smem:[#allocation16_spill]] %s1103_s1 }
   0x2   :  { %8 = vsyncpa [#allocation4], 0 }
   0x3   :  { %10 = vsyncpa [#allocation4 + $0x1], 0 }
   0x4   :  { %11 = vsyncpa [#allocation7], 0 }
   0x5   :  { %13 = vsyncpa [#allocation7 + $0x1], 0 }
   0x6   :  { %14 = vsyncpa [#allocation5], 0 }
   0x7   :  { %16 = vsyncpa [#allocation5 + $0x1], 0  ;;  %s842_s12 = smov 0   ;;  %s844_s13 = smov 0  }
   0x8   :  { %s846_s14 = smov 0   ;;  %s848_s15 = smov 0  }
   0x9   :  { %s850_s16 = smov 0   ;;  %s852_s17 = smov 0  }
   0xa LB: > { %1112 = sst [smem:[#allocation13_spill]] %s810_s16  ;;  %s873_s18 = sadd.s32 4294967295, %s814_s17   ;;  %s814_s17 = sphi %s852_s17, %s22_s17   ;;  %s810_s16 = sphi %s850_s16, %s1131_s16   ;;  %s806_s15 = sphi %s848_s15, %s1130_s15   ;;  %s802_s14 = sphi %s846_s14, %s1134_s14   ;;  %s798_s13 = sphi %s844_s13, %s1133_s13   ;;  %s794_s12 = sphi %s842_s12, %s1132_s12  }
   0xb   : > { %s540_s19 = sadd.s32 4294967294, %s814_s17   ;;  %s41_s20 = sadd.s32 1, %s810_s16 }
   0xc   : > { %s56_s21 = sadd.s32 1, %s802_s14  ;;  %p43_p0 = scmp.ge.s32.totalorder %s41_s20, 2 }
   0xd   : > { %p63_p1 = scmp.ne.s32.totalorder %s802_s14, %s798_s13  ;;  %p64_p2 = scmp.eq.s32.totalorder %s814_s17, 0 }
   0xe   : > { %p69_p3 = scmp.ne.s32.totalorder %s798_s13, %s794_s12  ;;  %s1136_s20 = smov (%p43_p0, %s41_s20), 0 }
   0xf   : > { %1113 = sst [smem:[#allocation14_spill]] %s1136_s20  ;;  %p885_p4 = por %p64_p2, %p63_p1 }
  0x10   : > { %p70_p5 = scmp.eq.s32.totalorder %s873_s18, 0  ;;  %s51_s23 = ssub.s32 %s810_s16, %s1136_s20 }
  0x11   : > { %p163_p6 = scmp.eq.s32.totalorder %s873_s18, 1  ;;  %p54_p7 = scmp.eq.s32.totalorder %s51_s23, 0 }
  0x12   : > { %p893_p8 = por %p70_p5, %p69_p3  ;;  %p169_p10 = scmp.eq.s32.totalorder %s540_s19, 1 }
  0x13   : > { %p897_p9 = por %p163_p6, %p63_p1  ;;  %p580_p13 = scmp.lt.s32.totalorder %s814_s17, 2 }
  0x14   : > { %s1115_s24 = scalar_select %p893_p8, 1, 0 }
  0x15   : > { %s1116_s25 = scalar_select %p897_p9, 1, 0 }
  0x16   : > { %s902_s26 = scalar_select %p54_p7, %s802_s14, %s56_s21  }
  0x17   : > { %p904_p11 = por %p169_p10, %p69_p3  ;;  %s911_s28 = sand.u32 1, %s802_s14  }
  0x18   : > { %1117 = sst [smem:[#allocation15_spill]] %s902_s26  ;;  %s211_s29 = sand.u32 1, %s814_s17  }
  0x19   : > { %s1118_s27 = scalar_select %p904_p11, 1, 0 }
  0x1a   : > { %s1106_s30 = sshll.u32 %s911_s28, 2  ;;  %p917_p0 = pnand %p580_p13, %p885_p4 }
  0x1b   : > { %s546_s5 = sshll.u32 %s810_s16, 6  ;;  %s1120_s1 = sld [smem:[#allocation16_spill]] }
  0x1c   : > { %s215_s9 = scalar_lea.vmem [#allocation6], %s1106_s30  ;;  %s934_s21 = scalar_lea.hbm %s1104_s2, %s546_s5 }
  0x1d   : > { %s226_s10 = sshll.u32 %s215_s9, 4  ;;  %s936_s22 = scalar_lea.sflag [#allocation7], %s211_s29  ;;  %s929_s10 = int_to_ptr.vmem [resolvable:$true] %s226_s10 }
  0x1e   : > { %p942_p2 = pneg %p917_p0 }
  0x21   : > { %s925_s8 = scalar_lea.hbm %s1120_s1, %s546_s5  ;;  %s643_s30 = scalar_lea.hbm %s1120_s1, 128 }
  0x22   : > { %s638_s23 = scalar_lea.hbm %s925_s8, 64  ;;  %p644_p5 = scmp.lt.u32.totalorder %s925_s8, %s1120_s1 }
  0x23   : > { %p639_p1 = scmp.ne.s32.totalorder %s925_s8, %s638_s23  ;;  %p645_p6 = scmp.lt.u32.totalorder %s643_s30, %s638_s23 }
  0x24   : > { %p647_p10 = scmp.lt.u32.totalorder %s638_s23, %s925_s8 }
  0x25   : > { %p641_p3 = pnand %p942_p2, %p639_p1  ;;  %p646_p7 = por %p645_p6, %p644_p5 }
  0x27   : > { %p642_p4 = pneg %p641_p3  ;;  %p648_p13 = por %p647_p10, %p646_p7 }
  0x29   : > { %p649_p12 = pnand %p648_p13, %p642_p4 }
  0x2b   : > { %652 = shalt.err (!%p649_p12)
}
  0x2c   : > { %s653_s29 = scalar_lea.vmem %s929_s10, 64  ;;  %s816_s19 = smov [#allocation6]  }
  0x2d   : > { %p654_p1 = scmp.ne.s32.totalorder %s929_s10, %s653_s29  ;;  %s658_s7 = sshll.u32 %s816_s19, 4  ;;  %s659_s7 = int_to_ptr.vmem [resolvable:$false] %s658_s7 }
  0x2e   : > { %s660_s9 = scalar_lea.vmem %s659_s7, 128  ;;  %p661_p9 = scmp.lt.s32.totalorder %s929_s10, %s659_s7 }
  0x2f   : > { %p656_p3 = pnand %p654_p1, %p942_p2  ;;  %p662_p8 = scmp.lt.s32.totalorder %s660_s9, %s653_s29 }
  0x31   : > { %p657_p11 = pneg %p656_p3  ;;  %p663_p5 = por %p662_p8, %p661_p9 }
  0x33   : > { %p664_p6 = pnand %p663_p5, %p657_p11 }
  0x35   : > { %667 = shalt.err (!%p664_p6)
}
  0x36   : > { %572 = dma.hbm_to_vmem [thread:$0]  (!%p917_p0), %s925_s8, 64, %s929_s10, %s936_s22  }
  0x37   : > { %p549_p12 = scmp.ge.s32.totalorder %s814_s17, 1  ;;  %p253_p4 = scmp.lt.s32.totalorder %s814_s17, 3 }
  0x38   : > { %s543_s23 = sshll.u32 %s911_s28, 3  ;;  %s544_s11 = sshll.u32 %s810_s16, 7 }
  0x39   : > { %p968_p7 = pnand %p549_p12, %p253_p4  ;;  %s977_s19 = scalar_lea.hbm %s1102_s0, %s544_s11 }
  0x3a   : > { %s193_s7 = scalar_lea.vmem [#allocation3], %s543_s23  ;;  %s1123_s10 = sshll.u32 %s911_s28, 2 }
  0x3b   : > { %s1122_s30 = scalar_select %p968_p7, 1, 0 }
  0x3c   : > { %s204_s8 = sshll.u32 %s193_s7, 4  ;;  %s237_s9 = scalar_lea.vmem [#allocation8], %s1123_s10  ;;  %s981_s8 = int_to_ptr.vmem [resolvable:$true] %s204_s8 }
  0x3d   : > { %s248_s1 = sshll.u32 %s237_s9, 4  ;;  %s190_s20 = scalar_lea.sflag [#allocation4], %s911_s28  ;;  %s983_s1 = int_to_ptr.vmem [resolvable:$true] %s248_s1 }
  0x3e   : > { %s668_s16 = scalar_lea.hbm %s977_s19, 128  ;;  %s673_s29 = scalar_lea.hbm %s1102_s0, 256 }
  0x3f   : > { %p669_p8 = scmp.ne.s32.totalorder %s977_s19, %s668_s16  ;;  %p674_p10 = scmp.lt.u32.totalorder %s977_s19, %s1102_s0 }
  0x40   : > { %p675_p13 = scmp.lt.u32.totalorder %s673_s29, %s668_s16  ;;  %p677_p3 = scmp.lt.u32.totalorder %s668_s16, %s977_s19 }
  0x41   : > { %p671_p9 = pnand %p669_p8, %p942_p2 }
  0x42   : > { %p676_p1 = por %p675_p13, %p674_p10 }
  0x43   : > { %p672_p11 = pneg %p671_p9 }
  0x44   : > { %p678_p5 = por %p677_p3, %p676_p1 }
  0x46   : > { %p679_p6 = pnand %p678_p5, %p672_p11 }
  0x48   : > { %682 = shalt.err (!%p679_p6)
}
  0x49   : > { %s683_s28 = scalar_lea.vmem %s981_s8, 128  ;;  %s817_s7 = smov [#allocation3]  }
  0x4a   : > { %p684_p12 = scmp.ne.s32.totalorder %s981_s8, %s683_s28  ;;  %s688_s10 = sshll.u32 %s817_s7, 4  ;;  %s689_s10 = int_to_ptr.vmem [resolvable:$false] %s688_s10 }
  0x4b   : > { %s690_s26 = scalar_lea.vmem %s689_s10, 256  ;;  %p691_p9 = scmp.lt.s32.totalorder %s981_s8, %s689_s10 }
  0x4c   : > { %p686_p4 = pnand %p684_p12, %p942_p2  ;;  %p692_p7 = scmp.lt.s32.totalorder %s690_s26, %s683_s28 }
  0x4e   : > { %p687_p8 = pneg %p686_p4  ;;  %p693_p10 = por %p692_p7, %p691_p9 }
  0x50   : > { %p694_p13 = pnand %p693_p10, %p687_p8 }
  0x52   : > { %697 = shalt.err (!%p694_p13)
}
  0x53   : > { %569 = dma.hbm_to_vmem [thread:$0]  (!%p917_p0), %s977_s19, 128, %s981_s8, %s190_s20  }
  0x54   : > { %s698_s16 = scalar_lea.hbm %s934_s21, 64  ;;  %s703_s5 = scalar_lea.hbm %s1104_s2, 128 }
  0x55   : > { %p699_p11 = scmp.ne.s32.totalorder %s934_s21, %s698_s16  ;;  %p704_p7 = scmp.lt.u32.totalorder %s934_s21, %s1104_s2 }
  0x56   : > { %p705_p5 = scmp.lt.u32.totalorder %s703_s5, %s698_s16  ;;  %p707_p12 = scmp.lt.u32.totalorder %s698_s16, %s934_s21 }
  0x57   : > { %p701_p1 = pnand %p699_p11, %p942_p2 }
  0x58   : > { %p706_p6 = por %p705_p5, %p704_p7 }
  0x59   : > { %p702_p3 = pneg %p701_p1 }
  0x5a   : > { %p708_p4 = por %p707_p12, %p706_p6 }
  0x5c   : > { %p709_p8 = pnand %p708_p4, %p702_p3 }
  0x5e   : > { %712 = shalt.err (!%p709_p8)
}
  0x5f   : > { %s713_s20 = scalar_lea.vmem %s983_s1, 64  ;;  %s818_s19 = smov [#allocation8]  }
  0x60   : > { %p714_p9 = scmp.ne.s32.totalorder %s983_s1, %s713_s20  ;;  %s718_s8 = sshll.u32 %s818_s19, 4  ;;  %s719_s8 = int_to_ptr.vmem [resolvable:$false] %s718_s8 }
  0x61   : > { %s720_s28 = scalar_lea.vmem %s719_s8, 128  ;;  %p721_p11 = scmp.lt.s32.totalorder %s983_s1, %s719_s8 }
  0x62   : > { %p716_p10 = pnand %p714_p9, %p942_p2  ;;  %p722_p1 = scmp.lt.s32.totalorder %s720_s28, %s713_s20 }
  0x64   : > { %p717_p13 = pneg %p716_p10  ;;  %p723_p7 = por %p722_p1, %p721_p11 }
  0x66   : > { %p724_p5 = pnand %p723_p7, %p717_p13 }
  0x68   : > { %727 = shalt.err (!%p724_p5)
}
  0x69   : > { %575 = dma.hbm_to_vmem [thread:$0]  (!%p917_p0), %s934_s21, 64, %s983_s1, %s936_s22  }
  0x6a   : > { %p1124_p3 = scmp.ne.s32.totalorder %s1122_s30, 0 }
  0x6b   : > { %s1032_s6 = sand.u32 (!%p1124_p3), 1, %s798_s13   ;;  %p1125_p2 = scmp.ne.s32.totalorder (!%p1124_p3), %s1115_s24, 0 }
  0x6c   : > { %257 = sbr.rel (%p1124_p3) target bundleno = 175 (0xaf), region = 32  ;;  %s550_s7 = sshll.u32 (!%p1124_p3), %s1032_s6, 3 }
  0x6d   : > { %s260_s10 = scalar_lea.sflag (!%p1124_p3), [#allocation4], %s1032_s6  ;;  %s263_s26 = scalar_lea.vmem (!%p1124_p3), [#allocation3], %s550_s7 }
  0x73   : > { %781 = dma.done.wait (%p1125_p2), %s260_s10, 128  }
  0x74   : > { %783 = vsyncadd (%p1125_p2), %s260_s10, 4294967168  ;;  %s268_s1 = sand.u32 1, %s873_s18   ;;  %s551_s4 = sshll.u32 %s1032_s6, 2 }
  0x75   : > { %s269_s21 = scalar_lea.sflag [#allocation7], %s268_s1  ;;  %s272_s22 = scalar_lea.vmem [#allocation6], %s551_s4 }
  0x76   : > { %785 = dma.done.wait (%p1125_p2), %s269_s21, 128  }
  0x77   : > { %787 = vsyncadd (%p1125_p2), %s269_s21, 4294967168  ;;  %v330_v0 = vld [vmem:[%s263_s26] sm:$0xff]  ;;  %s281_s18 = scalar_lea.vmem [#allocation8], %s551_s4  ;;  %v331_v8 = vld [vmem:[%s272_s22] sm:$0xf]  ;;  %s556_s30 = smul.u32 24, %s1032_s6 }
  0x78   : > { %v335_v1 = vand.u32 2147483647, %v330_v0  ;;  %v333_v7 = vld [vmem:[%s281_s18] sm:$0xf]  ;;  %v332_v12 = vunpack.c.l.bf16 %v331_v8  ;;  %vm341_vm0 = vcmp.ge.f32.partialorder %v330_v0, 0.0  ;;  %v344_v17 = vmax.f32 %v330_v0, 0.0 }
  0x79   : > { %v334_v11 = vunpack.c.l.bf16 %v333_v7  ;;  %s557_s24 = smul.u32 384, %s806_s15  ;;  %s313_s16 = scalar_lea.vmem [#allocation9], %s556_s30 }
  0x7a   : > { %v336_v2 = vsub.f32 0.0, %v335_v1  ;;  %v361_v21 = vmul.f32 %v332_v12, %v330_v0  ;;  %s406_s9 = sshll.u32 %s313_s16, 4  ;;  %s391_s15 = scalar_lea.sflag [#allocation5], %s1032_s6  ;;  %s1053_s9 = int_to_ptr.vmem [resolvable:$true] %s406_s9 }
  0x7b   : > { %v355_v18 = vadd.f32 1.0, %v334_v11  ;;  %s1051_s29 = scalar_lea.hbm %s1105_s3, %s557_s24  ;;  %s728_s23 = scalar_lea.vmem %s1053_s9, 384 }
  0x7c   : > { %v337_v3 = vmul.f32 1.442695, %v336_v2  ;;  %p729_p0 = scmp.ne.s32.totalorder %s1053_s9, %s728_s23  ;;  %p1126_p6 = scmp.ne.s32.totalorder %s1116_s25, 0 }
  0x7d   : > { %s819_s20 = smov [#allocation9]  }
  0x7e   : > { %632 = vpow2.f32 %v337_v3  ;;  %p730_p12 = pnand %p729_p0, %p1126_p6  ;;  %s732_s19 = sshll.u32 %s819_s20, 4  ;;  %s733_s19 = int_to_ptr.vmem [resolvable:$false] %s732_s19 }
  0x7f   : > { %s734_s8 = scalar_lea.vmem %s733_s19, 768  ;;  %p735_p8 = scmp.lt.s32.totalorder %s1053_s9, %s733_s19 }
  0x80   : > { %p731_p4 = pneg %p730_p12  ;;  %p736_p9 = scmp.lt.s32.totalorder %s734_s8, %s728_s23 }
  0x82   : > { %p737_p10 = por %p736_p9, %p735_p8 }
  0x84   : > { %p738_p13 = pnand %p737_p10, %p731_p4 }
  0x88   : > { %v633_v4 = vpop.eup %632 }
  0x89   : > { %v339_v5 = vadd.f32 1.0, %v633_v4  ;;  %v348_v6 = vmul.f32 -0.5, %v633_v4  ;;  %v351_v10 = vand.u32 2147483647, %v633_v4 }
  0x8b   : > { %634 = vrcp.f32 %v339_v5  ;;  %v349_v9 = vadd.f32 1.0, %v348_v6  ;;  %vm352_vm1 = vcmp.lt.f32.partialorder %v351_v10, 0.0004427343 }
  0x8c   : > { %636 = vlog2.f32 %v339_v5 }
  0x8d   : > { %v350_v14 = vmul.f32 %v633_v4, %v349_v9 }
  0x95   : > { %v635_v13 = vpop.eup %634 }
  0x96   : > { %v637_v15 = vpop.eup %636  ;;  %v342_v16 = vmul.f32 %v635_v13, %v633_v4 }
  0x97   : > { %v347_v19 = vmul.f32 0.6931472, %v637_v15 }
  0x98   : > { %v343_v20 = vsel %vm341_vm0, %v635_v13, %v342_v16 }
  0x99   : > { %v356_v22 = vmul.f32 %v343_v20, %v332_v12  ;;  %v357_v23 = vadd.f32 %v343_v20, %v332_v12  ;;  %v353_v24 = vsel %vm352_vm1, %v350_v14, %v347_v19 }
  0x9a   : > { %v354_v25 = vadd.f32 %v353_v24, %v344_v17 }
  0x9b   : > { %387 = vst [vmem:[%s313_s16] sm:$0xff] %v356_v22  ;;  %v358_v26 = vmul.f32 %v357_v23, %v355_v18  ;;  %v359_v27 = vmul.f32 %v356_v22, %v334_v11 }
  0x9c   : > { %v362_v28 = vsub.f32 %v361_v21, %v354_v25 }
  0x9d   : > { %v360_v29 = vsub.f32 %v358_v26, %v359_v27 }
  0x9e   : > { %v363_v30 = vmul.f32 %v362_v28, %v355_v18 }
  0x9f   : > { %388 = vst [vmem:[%s313_s16 + $0x8] sm:$0xff] %v360_v29 }
  0xa0   : > { %389 = vst [vmem:[%s313_s16 + $0x10] sm:$0xff] %v363_v30 }
  0xa1   : > { %741 = shalt.err (!%p738_p13)
}
  0xa2   : > { %s742_s28 = scalar_lea.hbm %s1051_s29, 384  ;;  %s746_s26 = scalar_lea.hbm %s1105_s3, 768 }
  0xa3   : > { %p743_p11 = scmp.ne.s32.totalorder %s1051_s29, %s742_s28  ;;  %p747_p5 = scmp.lt.u32.totalorder %s1051_s29, %s1105_s3 }
  0xa4   : > { %p748_p3 = scmp.lt.u32.totalorder %s746_s26, %s742_s28  ;;  %p750_p0 = scmp.lt.u32.totalorder %s742_s28, %s1051_s29 }
  0xa5   : > { %p744_p1 = pnand %p743_p11, %p1126_p6 }
  0xa6   : > { %p749_p2 = por %p748_p3, %p747_p5 }
  0xa7   : > { %p745_p7 = pneg %p744_p1 }
  0xa8   : > { %p751_p12 = por %p750_p0, %p749_p2 }
  0xaa   : > { %p752_p4 = pnand %p751_p12, %p745_p7 }
  0xac   : > { %755 = shalt.err (!%p752_p4)
}
  0xad   : > { %s820_s21 = smov 128   ;;  %s821_s22 = smov 8  }
  0xae   : > { %564 = dma.vmem_to_hbm [thread:$0]  (%p1126_p6), %s1053_s9, 384, %s1051_s29, %s391_s15, %s820_s21, %s820_s21, %s821_s22  }
  0xaf PF: > { %s421_s18 = sand.u32 1, %s794_s12   ;;  %p1127_p8 = scmp.ne.s32.totalorder %s1118_s27, 0 }
  0xb0   : > { %p1128_p9 = scmp.ge.s32.totalorder %s814_s17, 2  ;;  %s422_s30 = scalar_lea.sflag [#allocation5], %s421_s18 }
  0xb2   : > { %p577_p10 = pnand %p1128_p9, %p1127_p8 }
  0xb4   : > { %789 = dma.done.wait (!%p577_p10), %s422_s30, 384  }
  0xb5   : > { %791 = vsyncadd (!%p577_p10), %s422_s30, 4294966912  ;;  %s22_s17 = sadd.s32 1, %s814_s17   ;;  %s1129_s24 = sld [smem:[#allocation15_spill]] }
  0xb6   : > { %p19_p13 = scmp.ge.s32.totalorder %s22_s17, 4   ;;  %s1130_s15 = sld [smem:[#allocation13_spill]] }
  0xb7   : > { %s1131_s16 = sld [smem:[#allocation14_spill]]  ;;  %s1132_s12 = smov %s798_s13 }
  0xb8   : > { %s1133_s13 = smov %s802_s14  ;;  %21 = sbr.rel (!%p19_p13) target bundleno = 10 (0xa), region = 111 }
  0xbb   : > { %s1134_s14 = smov %s1129_s24 }
  0xbf   :  { %427 = vsyncpa [#allocation4], 1 }
  0xc0   :  { %429 = vsyncpa [#allocation4 + $0x1], 1 }
  0xc1   :  { %430 = vsyncpa [#allocation7], 1 }
  0xc2   :  { %432 = vsyncpa [#allocation7 + $0x1], 1 }
  0xc3   :  { %433 = vsyncpa [#allocation5], 1 }
  0xc4   :  { %435 = vsyncpa [#allocation5 + $0x1], 1 }

</bundles_post_ra>
